<compile_context>
chip_gen: v6e
topology: v6e:2x2x1
jax: 0.10.0
libtpu: 0.0.40
codegen_flags: <defaults>
</compile_context>

<pallas_src>
import functools

import jax
import jax.numpy as jnp
from jax.experimental import pallas as pl
from jax.experimental.pallas import tpu as pltpu

H1 = 128      # fc1 out features
H2 = 64       # fc2 out features
LANES = 128   # TPU lane width / padded feature width


def _round_up(n, m):
    return ((n + m - 1) // m) * m


def _mlp_kernel(x_ref, w_ref, b_ref, o_ref, *, in_dim, in_p):
    # x_ref: (TB, in_dim) f32  -- cast to bf16 in-kernel (no wrapper-side repack of x)
    # w_ref: (in_p + 2*128, 128) bf16 -- [w1 (rows>=in_dim zero) | w2 (cols>=64 zero)
    #                                     | w3 (rows>=64, cols>=out zero)]
    # b_ref: (3, 128) f32             -- rows: b1, b2 (padded), b3 (padded)
    # o_ref: (TB, 128) bf16           -- lane-dense output tile
    x = x_ref[...].astype(jnp.bfloat16)                 # (TB, in_dim)
    w1 = w_ref[0:in_dim, :]                             # (in_dim, 128)
    w2 = w_ref[in_p:in_p + LANES, :]                    # (128, 128)
    w3 = w_ref[in_p + LANES:in_p + 2 * LANES, :]        # (128, 128)

    # fc1 + ReLU   (dropout p=0.5 -> identity in eval mode)
    h1 = jnp.dot(x, w1, preferred_element_type=jnp.float32)
    h1 = jnp.maximum(h1 + b_ref[0:1, :], 0.0)

    # fc2 + ReLU   (dropout identity)
    h2 = jnp.dot(h1.astype(jnp.bfloat16), w2, preferred_element_type=jnp.float32)
    h2 = jnp.maximum(h2 + b_ref[1:2, :], 0.0)

    # fc3
    h3 = jnp.dot(h2.astype(jnp.bfloat16), w3, preferred_element_type=jnp.float32)
    o_ref[...] = (h3 + b_ref[2:3, :]).astype(o_ref.dtype)


def init_params(key, input_size, output_size):
    """nn.Linear-style init; weights stored transposed (in_features, out_features)."""
    dims = [(input_size, H1), (H1, H2), (H2, output_size)]
    params = {}
    for i, (fan_in, fan_out) in enumerate(dims, start=1):
        key, kw, kb = jax.random.split(key, 3)
        bound = 1.0 / jnp.sqrt(fan_in)
        params[f"w{i}"] = jax.random.uniform(
            kw, (fan_in, fan_out), jnp.float32, -bound, bound)
        params[f"b{i}"] = jax.random.uniform(
            kb, (1, fan_out), jnp.float32, -bound, bound)
    return params


def pack_params(params, input_size, output_size):
    """Pack 3 weights into one bf16 buffer and 3 biases into one f32 buffer.

    Every sub-block is zero-padded to 128 lanes; w1 rows are padded to a multiple of
    16 (bf16 sublane tile) so the w2/w3 slices in the kernel stay tile-aligned.
    The zero padding is mathematically a no-op.
    """
    in_p = _round_up(input_size, 16)   # bf16 sublane tile
    assert in_p % 16 == 0, "w1 row padding must stay a multiple of 16 (bf16 sublanes)"
    w1 = jnp.zeros((in_p, LANES), jnp.float32).at[:input_size, :].set(params["w1"])
    w2 = jnp.zeros((LANES, LANES), jnp.float32).at[:, :H2].set(params["w2"])
    w3 = jnp.zeros((LANES, LANES), jnp.float32).at[:H2, :output_size].set(params["w3"])
    w_packed = jnp.concatenate([w1, w2, w3], axis=0).astype(jnp.bfloat16)

    b = jnp.zeros((3, LANES), jnp.float32)
    b = b.at[0, :H1].set(params["b1"].reshape(-1))
    b = b.at[1, :H2].set(params["b2"].reshape(-1))
    b = b.at[2, :output_size].set(params["b3"].reshape(-1))
    return {"w": w_packed, "b": b, "in_p": in_p,
            "in_dim": input_size, "out_dim": output_size}


def chatbot_forward(x, packed, *, tb=512):
    """x: (B, input_size) f32; packed: output of pack_params. Returns (B, output_size) f32."""
    in_dim, in_p, out_dim = packed["in_dim"], packed["in_p"], packed["out_dim"]
    w_packed, b_packed = packed["w"], packed["b"]
    B, _ = x.shape

    # Batch-tile selection:
    #   * multiples of 16 rows (bf16 output tile, also satisfies f32's 8-row tile)
    #   * big tiles amortize the ~0.35us per-grid-step overhead
    #   * but keep >= 2 grid steps whenever the batch allows it, so v7x's two
    #     TensorCores can split the "parallel" grid axis (v5e/v6e: harmless).
    b16 = _round_up(B, 16)
    tb = _round_up(min(tb, b16), 16)
    if pl.cdiv(b16, tb) < 2 and b16 > 16:
        tb = _round_up(pl.cdiv(b16, 2), 16)
    b_pad = _round_up(b16, tb)

    # Only batch-tail padding (no feature widening, no dtype cast in the wrapper).
    x_in = x if b_pad == B else jnp.pad(x, ((0, b_pad - B), (0, 0)))

    grid = (b_pad // tb,)
    w_rows = in_p + 2 * LANES

    flops = 2 * b_pad * (in_dim * LANES + LANES * LANES + LANES * LANES)
    bytes_accessed = (b_pad * in_dim * 4          # x read (f32)
                      + w_packed.size * 2         # packed weights (bf16, read once)
                      + b_packed.size * 4         # packed biases (f32, read once)
                      + b_pad * LANES * 2)        # bf16 output writeback

    out = pl.pallas_call(
        functools.partial(_mlp_kernel, in_dim=in_dim, in_p=in_p),
        out_shape=jax.ShapeDtypeStruct((b_pad, LANES), jnp.bfloat16),
        grid=grid,
        in_specs=[
            pl.BlockSpec((tb, in_dim), lambda i: (i, 0)),        # batch tile of x (f32)
            pl.BlockSpec((w_rows, LANES), lambda i: (0, 0)),     # packed weights: VMEM-resident
            pl.BlockSpec((3, LANES), lambda i: (0, 0)),          # packed biases: VMEM-resident
        ],
        out_specs=pl.BlockSpec((tb, LANES), lambda i: (i, 0)),   # lane-dense bf16 output tile
        compiler_params=pltpu.CompilerParams(
            dimension_semantics=("parallel",)),                  # v7x: shard steps over 2 TCs
        cost_estimate=pl.CostEstimate(
            flops=flops, transcendentals=0, bytes_accessed=bytes_accessed),
    )(x_in, w_packed, b_packed)

    return out[:B, :out_dim].astype(jnp.float32)


def _reference(x, params):
    """Plain-JAX reference with the same bf16 rounding of x / weights / activations / output."""
    bf = lambda a: a.astype(jnp.bfloat16).astype(jnp.float32)
    h = jnp.maximum(bf(x) @ bf(params["w1"]) + params["b1"], 0.0)
    h = jnp.maximum(bf(h) @ bf(params["w2"]) + params["b2"], 0.0)
    out = bf(h) @ bf(params["w3"]) + params["b3"]
    return bf(out)   # kernel stores a bf16 output tile


if __name__ == "__main__":
    key = jax.random.PRNGKey(0)
    k_params, k_x, k_x2 = jax.random.split(key, 3)

    input_size = 32
    output_size = 16

    params = init_params(k_params, input_size, output_size)
    packed = pack_params(params, input_size, output_size)

    # Main check: batch large enough that the tb-halving logic produces a 2-step grid
    # (512 rows -> 2 x 256-row tiles), exercising the megacore-friendly path.
    batch = 512
    x = jax.random.normal(k_x, (batch, input_size), jnp.float32)
    out = jax.block_until_ready(chatbot_forward(x, packed))
    ref = _reference(x, params)
    assert out.shape == (batch, output_size)
    assert jnp.allclose(out, ref, atol=1e-2, rtol=1e-2)

    # Small-batch check: exercises the batch-tail row-padding path (B=2 -> one 16-row tile).
    x_small = jax.random.normal(k_x2, (2, input_size), jnp.float32)
    out_small = jax.block_until_ready(chatbot_forward(x_small, packed))
    ref_small = _reference(x_small, params)
    assert out_small.shape == (2, output_size)
    assert jnp.allclose(out_small, ref_small, atol=1e-2, rtol=1e-2)

    print("KERNEL_OK")
</pallas_src>

<mosaic_0001>
module attributes {stable_mosaic.version = 11 : i64} {
  func.func @_mlp_kernel(%arg0: i32, %arg1: memref<256x32xf32, #tpu.memory_space<vmem>>, %arg2: memref<288x128xbf16, #tpu.memory_space<vmem>>, %arg3: memref<3x128xf32, #tpu.memory_space<vmem>>, %arg4: memref<256x128xbf16, #tpu.memory_space<vmem>>) attributes {dimension_semantics = [#tpu.dimension_semantics<parallel>], iteration_bounds = array<i64: 2>, scalar_prefetch = 0 : i64, scratch_operands = 0 : i64, tpu.core_type = #tpu.core_type<tc>, window_params = [{transform_indices = @transform_0, window_bounds = array<i64: 256, 32>}, {pipeline_mode = #tpu.pipeline_mode<synchronous>, transform_indices = @transform_1, window_bounds = array<i64: 288, 128>}, {pipeline_mode = #tpu.pipeline_mode<synchronous>, transform_indices = @transform_2, window_bounds = array<i64: 3, 128>}, {transform_indices = @transform_3, window_bounds = array<i64: 256, 128>}]} {
    %c0 = arith.constant 0 : index
    %c0_0 = arith.constant 0 : index
    %0 = vector.load %arg1[%c0, %c0_0] : memref<256x32xf32, #tpu.memory_space<vmem>>, vector<256x32xf32>
    %1 = arith.truncf %0 : vector<256x32xf32> to vector<256x32xbf16>
    %c0_1 = arith.constant 0 : index
    %c0_2 = arith.constant 0 : index
    %2 = vector.load %arg2[%c0_1, %c0_2] : memref<288x128xbf16, #tpu.memory_space<vmem>>, vector<32x128xbf16>
    %c32 = arith.constant 32 : index
    %c0_3 = arith.constant 0 : index
    %3 = vector.load %arg2[%c32, %c0_3] : memref<288x128xbf16, #tpu.memory_space<vmem>>, vector<128x128xbf16>
    %c160 = arith.constant 160 : index
    %c0_4 = arith.constant 0 : index
    %4 = vector.load %arg2[%c160, %c0_4] : memref<288x128xbf16, #tpu.memory_space<vmem>>, vector<128x128xbf16>
    %cst = arith.constant dense<0.000000e+00> : vector<256x128xf32>
    %5 = tpu.matmul %1, %2, %cst {dimension_numbers = #tpu.dot_dimension_numbers<[1], [0], [0], [1], [0, 0, 1, 1], [], []>} : vector<256x32xbf16>, vector<32x128xbf16>, vector<256x128xf32> -> vector<256x128xf32>
    %c0_5 = arith.constant 0 : index
    %c0_6 = arith.constant 0 : index
    %6 = vector.load %arg3[%c0_5, %c0_6] : memref<3x128xf32, #tpu.memory_space<vmem>>, vector<1x128xf32>
    %7 = vector.broadcast %6 : vector<1x128xf32> to vector<256x128xf32>
    %8 = arith.addf %5, %7 : vector<256x128xf32>
    %cst_7 = arith.constant 0.000000e+00 : f32
    %9 = vector.broadcast %cst_7 : f32 to vector<256x128xf32>
    %10 = arith.maximumf %8, %9 : vector<256x128xf32>
    %11 = arith.truncf %10 : vector<256x128xf32> to vector<256x128xbf16>
    %cst_8 = arith.constant dense<0.000000e+00> : vector<256x128xf32>
    %12 = tpu.matmul %11, %3, %cst_8 {dimension_numbers = #tpu.dot_dimension_numbers<[1], [0], [0], [1], [0, 0, 1, 1], [], []>} : vector<256x128xbf16>, vector<128x128xbf16>, vector<256x128xf32> -> vector<256x128xf32>
    %c1 = arith.constant 1 : index
    %c0_9 = arith.constant 0 : index
    %13 = vector.load %arg3[%c1, %c0_9] : memref<3x128xf32, #tpu.memory_space<vmem>>, vector<1x128xf32>
    %14 = vector.broadcast %13 : vector<1x128xf32> to vector<256x128xf32>
    %15 = arith.addf %12, %14 : vector<256x128xf32>
    %cst_10 = arith.constant 0.000000e+00 : f32
    %16 = vector.broadcast %cst_10 : f32 to vector<256x128xf32>
    %17 = arith.maximumf %15, %16 : vector<256x128xf32>
    %18 = arith.truncf %17 : vector<256x128xf32> to vector<256x128xbf16>
    %cst_11 = arith.constant dense<0.000000e+00> : vector<256x128xf32>
    %19 = tpu.matmul %18, %4, %cst_11 {dimension_numbers = #tpu.dot_dimension_numbers<[1], [0], [0], [1], [0, 0, 1, 1], [], []>} : vector<256x128xbf16>, vector<128x128xbf16>, vector<256x128xf32> -> vector<256x128xf32>
    %c2 = arith.constant 2 : index
    %c0_12 = arith.constant 0 : index
    %20 = vector.load %arg3[%c2, %c0_12] : memref<3x128xf32, #tpu.memory_space<vmem>>, vector<1x128xf32>
    %21 = vector.broadcast %20 : vector<1x128xf32> to vector<256x128xf32>
    %22 = arith.addf %19, %21 : vector<256x128xf32>
    %23 = arith.truncf %22 : vector<256x128xf32> to vector<256x128xbf16>
    %c0_13 = arith.constant 0 : index
    %c0_14 = arith.constant 0 : index
    %24 = vector.load %arg4[%c0_13, %c0_14] : memref<256x128xbf16, #tpu.memory_space<vmem>>, vector<256x128xbf16>
    tpu.vector_store %arg4[%c0_13, %c0_14], %23 {strides = array<i32>} : memref<256x128xbf16, #tpu.memory_space<vmem>>, vector<256x128xbf16>,
    return
  }
  func.func @transform_0(%arg0: i32) -> (i32, i32) {
    %c0_i32 = arith.constant 0 : i32
    %c0_i32_0 = arith.constant 0 : i32
    return %arg0, %c0_i32 : i32, i32
  }
  func.func @transform_1(%arg0: i32) -> (i32, i32) {
    %c0_i32 = arith.constant 0 : i32
    %c0_i32_0 = arith.constant 0 : i32
    %c0_i32_1 = arith.constant 0 : i32
    return %c0_i32, %c0_i32_0 : i32, i32
  }
  func.func @transform_2(%arg0: i32) -> (i32, i32) {
    %c0_i32 = arith.constant 0 : i32
    %c0_i32_0 = arith.constant 0 : i32
    %c0_i32_1 = arith.constant 0 : i32
    return %c0_i32, %c0_i32_0 : i32, i32
  }
  func.func @transform_3(%arg0: i32) -> (i32, i32) {
    %c0_i32 = arith.constant 0 : i32
    %c0_i32_0 = arith.constant 0 : i32
    return %arg0, %c0_i32 : i32, i32
  }
}

</mosaic_0001>

<bundles_post_ra>
// kernel: tpu_custom_call.1
= control target key start
LH: loop header
LB: loop body
LE: loop exit
PB: predicated region body
PF: predicated region fallthrough
CT: control target
= control target key end

     0   :  { %8 = vsyncpa [#allocation3], 0  ;;  %s2153_s0 = inlined_call_operand.vmem [shape: f32[512,32], index: 0, kind: input, shape index: {}]   ;;  %s2154_s1 = inlined_call_operand.vmem [shape: bf16[288,128], index: 1, kind: input, shape index: {}]   ;;  %s2155_s2 = inlined_call_operand.vmem [shape: f32[3,128], index: 2, kind: input, shape index: {}]   ;;  %s2156_s3 = inlined_call_operand.hbm [shape: bf16[512,128], index: 3, kind: output, shape index: {}]  }
   0x1   :  { %10 = vsyncpa [#allocation3 + $0x1], 0  ;;  %s1799_s12 = smov 0   ;;  %s1801_s13 = smov 0  }
   0x2   :  { %s1803_s14 = smov 0   ;;  %s1805_s15 = smov 0  }
   0x3 LB: > { %s1820_s16 = sadd.s32 4294967295, %s1774_s15   ;;  %s1244_s17 = sadd.s32 4294967294, %s1774_s15   ;;  %s1774_s15 = sphi %s1805_s15, %s2162_s15   ;;  %s1770_s14 = sphi %s1803_s14, %s2161_s14   ;;  %s1766_s13 = sphi %s1801_s13, %s2160_s13   ;;  %s1762_s12 = sphi %s1799_s12, %s2159_s12  }
   0x4   : > { %s1824_s18 = sadd.s32 1, %s1774_s15   ;;  %s91_s19 = sadd.s32 1, %s1770_s14 }
   0x5   : > { %s88_s20 = ssub.s32 %s1774_s15, %s1824_s18  ;;  %p101_p0 = scmp.ne.s32.totalorder %s1770_s14, %s1766_s13 }
   0x6   : > { %p89_p1 = scmp.eq.s32.totalorder %s88_s20, 0  ;;  %p102_p2 = scmp.eq.s32.totalorder %s1820_s16, 1 }
   0x7   : > { %p107_p3 = scmp.ne.s32.totalorder %s1766_s13, %s1762_s12  ;;  %p108_p4 = scmp.eq.s32.totalorder %s1244_s17, 1 }
   0x8   : > { %s1835_s21 = scalar_select %p89_p1, %s1770_s14, %s91_s19  }
   0x9   : > { %p1837_p5 = por %p102_p2, %p101_p0  ;;  %p1841_p6 = por %p108_p4, %p107_p3 }
   0xa   : > { %p1247_p7 = scmp.ge.s32.totalorder %s1774_s15, 1  ;;  %p141_p8 = scmp.lt.s32.totalorder %s1774_s15, 3 }
   0xc   : > { %p142_p9 = pnand %p1247_p7, %p141_p8 }
   0xd   : > { %s1249_s26 = sshll.u32 (!%p142_p9), %s1820_s16, 5  ;;  %s162_s6 = sand.u32 (!%p142_p9), 1, %s1766_s13  }
   0xe   : > { %145 = sbr.rel (%p142_p9) target bundleno = 713 (0x2c9), region = 32  ;;  %p166_p10 = scmp.lt.s32.totalorder (!%p142_p9), %s1249_s26, 63 }
   0xf   : > { %s1248_s9 = sshll.u32 (!%p142_p9), %s162_s6, 7  ;;  %s1357_s11 = sshll.u32 (!%p142_p9), %s1820_s16, 11 }
  0x10   : > { %s2056_s10 = scalar_lea.vmem (!%p142_p9), [#allocation2], %s1248_s9  ;;  %s2105_s24 = scalar_lea.hbm (!%p142_p9), %s2156_s3, %s1357_s11 }
  0x11   : > { %s1182_s17 = sshll.u32 (!%p142_p9), %s2056_s10, 4  ;;  %s2113_s16 = scalar_lea.sflag (!%p142_p9), [#allocation3], %s162_s6  ;;  %s2107_s17 = int_to_ptr.vmem [resolvable:$true] %s1182_s17 }
  0x12   : > { %s1714_s25 = scalar_lea.vmem (!%p142_p9), %s2107_s17, 2048 }
  0x13   : > { %v1696_v0 = vld [vmem:[%s2154_s1 + $0x8] sm:$0xff]   ;;  %v1697_v1 = vld [vmem:[%s2154_s1] sm:$0xff]   ;;  %s2164_s26 = smov (!%p166_p10, %s1249_s26), 63  ;;  %vm274_vm0 = vcmask 261120   ;;  %v1700_v30 = vld [vmem:[%s2154_s1 + $0x38] sm:$0xff]   ;;  %p1715_p11 = scmp.ne.s32.totalorder %s2107_s17, %s1714_s25 }
  0x14   : > { %1519 = vmatprep.subr.bf16.mxu0 %v1696_v0  ;;  %1651 = vmatprep.subr.bf16.mxu1 %v1696_v0  ;;  %v1698_v2 = vld [vmem:[%s2154_s1 + $0x48] sm:$0xff]   ;;  %s1250_s4 = sshll.u32 %s2164_s26, 3  ;;  %v1699_v24 = vld [vmem:[%s2154_s1 + $0x40] sm:$0xff]   ;;  %v1701_v38 = vld [vmem:[%s2154_s1 + $0x30] sm:$0xff]   ;;  %s1776_s26 = smov [#allocation2]  }
  0x15   : > { %1520 = vmatpush3.bf16.msra.mxu0 %v1696_v0  ;;  %1653 = vmatpush3.bf16.msra.mxu1 %v1696_v0  ;;  %s1860_s7 = scalar_lea.vmem %s2153_s0, %s1250_s4  ;;  %v1702_v46 = vld [vmem:[%s2154_s1 + $0x28] sm:$0xff]   ;;  %v1703_v55 = vld [vmem:[%s2154_s1 + $0x20] sm:$0xff]   ;;  %v1704_v56 = vld [vmem:[%s2154_s1 + $0x18] sm:$0xff]   ;;  %p1716_p12 = pnand %p1715_p11, %p1837_p5 }
  0x16   : > { %1521 = vmatprep.subr.bf16.mxu0 %v1697_v1  ;;  %1652 = vmatprep.subr.bf16.mxu1 %v1697_v1  ;;  %v173_v3 = vld [vmem:[%s1860_s7] sm:$0xff]  ;;  %v174_v4 = vld [vmem:[%s1860_s7 + $0x8] sm:$0xff]  ;;  %v175_v5 = vld [vmem:[%s1860_s7 + $0x10] sm:$0xff]  ;;  %s1718_s27 = sshll.u32 %s1776_s26, 4  ;;  %s1719_s27 = int_to_ptr.vmem [resolvable:$false] %s1718_s27 }
  0x17   : > { %v205_v6 = vpack.c.bf16 %v174_v4, %v173_v3  ;;  %v176_v7 = vld [vmem:[%s1860_s7 + $0x18] sm:$0xff]  ;;  %v177_v8 = vld [vmem:[%s1860_s7 + $0x20] sm:$0xff]  ;;  %v178_v9 = vld [vmem:[%s1860_s7 + $0x28] sm:$0xff]  ;;  %p1717_p13 = pneg %p1716_p12  ;;  %s1720_s28 = scalar_lea.vmem %s1719_s27, 4096 }
  0x18   : > { %v206_v10 = vpack.c.bf16 %v176_v7, %v175_v5  ;;  %v207_v11 = vpack.c.bf16 %v178_v9, %v177_v8  ;;  %v179_v12 = vld [vmem:[%s1860_s7 + $0x30] sm:$0xff]  ;;  %v180_v13 = vld [vmem:[%s1860_s7 + $0x38] sm:$0xff]  ;;  %v181_v14 = vld [vmem:[%s1860_s7 + $0x40] sm:$0xff]  ;;  %p1721_p0 = scmp.lt.s32.totalorder %s2107_s17, %s1719_s27  ;;  %p1722_p1 = scmp.lt.s32.totalorder %s1720_s28, %s1714_s25 }
  0x19   : > { %1522 = vmatpush3.bf16.msra.mxu0 %v1697_v1  ;;  %1654 = vmatpush3.bf16.msra.mxu1 %v1697_v1  ;;  %v182_v15 = vld [vmem:[%s1860_s7 + $0x48] sm:$0xff]  ;;  %v189_v16 = vld [vmem:[%s1860_s7 + $0x80] sm:$0xff]  ;;  %v191_v19 = vld [vmem:[%s1860_s7 + $0x90] sm:$0xff]  ;;  %v208_v25 = vpack.c.bf16 %v180_v13, %v179_v12 }
  0x1a   : > { %1555 = vmatprep.subr.bf16.mxu1 %v1698_v2  ;;  %1523 = vmatprep.mubr.msk.bf16.mxu0 %vm274_vm0, %v205_v6  ;;  %v190_v17 = vld [vmem:[%s1860_s7 + $0x88] sm:$0xff]  ;;  %v192_v20 = vld [vmem:[%s1860_s7 + $0x98] sm:$0xff]  ;;  %v193_v21 = vld [vmem:[%s1860_s7 + $0xa0] sm:$0xff]  ;;  %v209_v27 = vpack.c.bf16 %v182_v15, %v181_v14  ;;  %p1723_p2 = por %p1722_p1, %p1721_p0 }
  0x1b   : > { %v213_v18 = vpack.c.bf16 %v190_v17, %v189_v16  ;;  %v214_v22 = vpack.c.bf16 %v192_v20, %v191_v19  ;;  %v194_v23 = vld [vmem:[%s1860_s7 + $0xa8] sm:$0xff]  ;;  %v195_v28 = vld [vmem:[%s1860_s7 + $0xb0] sm:$0xff]  ;;  %v196_v29 = vld [vmem:[%s1860_s7 + $0xb8] sm:$0xff] }
  0x1c   : > { %1524 = vmatmul.mubr.msk.bf16.vlgmr.msra.gmra.mxu0 %vm274_vm0, %v206_v10  ;;  %v215_v26 = vpack.c.bf16 %v194_v23, %v193_v21  ;;  %v197_v31 = vld [vmem:[%s1860_s7 + $0xc0] sm:$0xff]  ;;  %v198_v32 = vld [vmem:[%s1860_s7 + $0xc8] sm:$0xff]  ;;  %v183_v33 = vld [vmem:[%s1860_s7 + $0x50] sm:$0xff]  ;;  %v216_v37 = vpack.c.bf16 %v196_v29, %v195_v28  ;;  %p1724_p3 = pnand %p1723_p2, %p1717_p13 }
  0x1d   : > { %1527 = vmatprep.mubr.msk.bf16.mxu0 %vm274_vm0, %v207_v11  ;;  %1539 = vmatprep.mubr.msk.bf16.mxu1 %vm274_vm0, %v213_v18  ;;  %v184_v34 = vld [vmem:[%s1860_s7 + $0x58] sm:$0xff]  ;;  %v185_v35 = vld [vmem:[%s1860_s7 + $0x60] sm:$0xff]  ;;  %v186_v36 = vld [vmem:[%s1860_s7 + $0x68] sm:$0xff]  ;;  %v217_v39 = vpack.c.bf16 %v198_v32, %v197_v31 }
  0x1e   : > { %1540 = vmatmul.mubr.msk.bf16.vlgmr.msra.gmra.mxu1 %vm274_vm0, %v214_v22  ;;  %v210_v40 = vpack.c.bf16 %v184_v34, %v183_v33  ;;  %v211_v41 = vpack.c.bf16 %v186_v36, %v185_v35  ;;  %v199_v42 = vld [vmem:[%s1860_s7 + $0xd0] sm:$0xff]  ;;  %v200_v43 = vld [vmem:[%s1860_s7 + $0xd8] sm:$0xff]  ;;  %v201_v44 = vld [vmem:[%s1860_s7 + $0xe0] sm:$0xff] }
  0x1f   : > { %1543 = vmatprep.mubr.msk.bf16.mxu1 %vm274_vm0, %v215_v26  ;;  %1556 = vmatpush3.bf16.msra.mxu1 %v1698_v2  ;;  %v202_v45 = vld [vmem:[%s1860_s7 + $0xe8] sm:$0xff]  ;;  %v187_v47 = vld [vmem:[%s1860_s7 + $0x70] sm:$0xff]  ;;  %v188_v48 = vld [vmem:[%s1860_s7 + $0x78] sm:$0xff]  ;;  %v218_v49 = vpack.c.bf16 %v200_v43, %v199_v42 }
  0x20   : > { %1557 = vmatprep.subr.bf16.mxu1 %v1699_v24  ;;  %v219_v50 = vpack.c.bf16 %v202_v45, %v201_v44  ;;  %v212_v51 = vpack.c.bf16 %v188_v48, %v187_v47  ;;  %v203_v52 = vld [vmem:[%s1860_s7 + $0xf0] sm:$0xff]  ;;  %v204_v53 = vld [vmem:[%s1860_s7 + $0xf8] sm:$0xff]  ;;  %v1706_v58 = vld [vmem:[%s2154_s1 + $0x88] sm:$0xff]  }
  0x21   : > { %v220_v54 = vpack.c.bf16 %v204_v53, %v203_v52  ;;  %v1705_v57 = vld [vmem:[%s2154_s1 + $0x10] sm:$0xff]   ;;  %v1707_v59 = vld [vmem:[%s2154_s1 + $0x80] sm:$0xff]   ;;  %1603 = vmatprep.subr.bf16.mxu0 %v1706_v58  ;;  %v1708_v60 = vld [vmem:[%s2154_s1 + $0x78] sm:$0xff]  }
  0x22   : > { %1604 = vmatpush3.bf16.msra.mxu0 %v1706_v58  ;;  %v1709_v61 = vld [vmem:[%s2154_s1 + $0x70] sm:$0xff]   ;;  %v1710_v62 = vld [vmem:[%s2154_s1 + $0x68] sm:$0xff]   ;;  %v1949_v1 = vld [vmem:[%s2155_s2] ss:$0 sm:$0xff] }
  0x23   : > { %1558 = vmatpush3.bf16.msra.mxu1 %v1699_v24  ;;  %1605 = vmatprep.subr.bf16.mxu0 %v1707_v59 }
  0x24   : > { %1528 = vmatmul.mubr.msk.bf16.gmra.mxu0 %vm274_vm0, %v208_v25  ;;  %1559 = vmatprep.subr.bf16.mxu1 %v1700_v30 }
  0x25   : > { %1531 = vmatprep.mubr.msk.bf16.mxu0 %vm274_vm0, %v209_v27 }
  0x26   : > { %1544 = vmatmul.mubr.msk.bf16.gmra.mxu1 %vm274_vm0, %v216_v37  ;;  %1606 = vmatpush3.bf16.msra.mxu0 %v1707_v59 }
  0x27   : > { %1547 = vmatprep.mubr.msk.bf16.mxu1 %vm274_vm0, %v217_v39  ;;  %1560 = vmatpush3.bf16.msra.mxu1 %v1700_v30 }
  0x28   : > { %1561 = vmatprep.subr.bf16.mxu1 %v1701_v38  ;;  %1607 = vmatprep.subr.bf16.mxu0 %v1708_v60 }
  0x2a   : > { %1608 = vmatpush3.bf16.msra.mxu0 %v1708_v60 }
  0x2b   : > { %1562 = vmatpush3.bf16.msra.mxu1 %v1701_v38  ;;  %1609 = vmatprep.subr.bf16.mxu0 %v1709_v61 }
  0x2c   : > { %1532 = vmatmul.mubr.msk.bf16.gmra.mxu0 %vm274_vm0, %v210_v40  ;;  %1563 = vmatprep.subr.bf16.mxu1 %v1702_v46 }
  0x2d   : > { %1535 = vmatprep.mubr.msk.bf16.mxu0 %vm274_vm0, %v211_v41 }
  0x2e   : > { %1548 = vmatmul.mubr.msk.bf16.gmra.mxu1 %vm274_vm0, %v218_v49  ;;  %1610 = vmatpush3.bf16.msra.mxu0 %v1709_v61 }
  0x2f   : > { %1551 = vmatprep.mubr.msk.bf16.mxu1 %vm274_vm0, %v219_v50  ;;  %1564 = vmatpush3.bf16.msra.mxu1 %v1702_v46 }
  0x30   : > { %1565 = vmatprep.subr.bf16.mxu1 %v1703_v55  ;;  %1611 = vmatprep.subr.bf16.mxu0 %v1710_v62 }
  0x32   : > { %1612 = vmatpush3.bf16.msra.mxu0 %v1710_v62 }
  0x33   : > { %1566 = vmatpush3.bf16.msra.mxu1 %v1703_v55 }
  0x34   : > { %1536 = vmatmul.mubr.msk.bf16.gmra.mxu0 %vm274_vm0, %v212_v51  ;;  %1567 = vmatprep.subr.bf16.mxu1 %v1704_v56 }
  0x36   : > { %1552 = vmatmul.mubr.msk.bf16.gmra.mxu1 %vm274_vm0, %v220_v54 }
  0x37   : > { %1568 = vmatpush3.bf16.msra.mxu1 %v1704_v56 }
  0x38   : > { %1569 = vmatprep.subr.bf16.mxu1 %v1705_v57 }
  0x3b   : > { %1570 = vmatpush3.bf16.msra.mxu1 %v1705_v57 }
  0xdc   : > { %v1525_v63 = vpop.f32.mrf.mxu0 }
  0xdd   : > { %v366_v6 = vadd.f32 %v1525_v63, %v1949_v1 }
  0xde   : > { %v357_v0 = vpop.f32.mrf.mxu0  ;;  %v1953_v5 = vpop.f32.mrf.mxu1 }
  0xdf   : > { %v358_v3 = vadd.f32 %v1949_v1, %v357_v0  ;;  %v486_v15 = vmax.f32 %v366_v6, 0.0 }
  0xe0   : > { %v1526_v2 = vpop.f32.mrf.mxu0  ;;  %v421_v9 = vpop.f32.mrf.mxu1 }
  0xe1   : > { %v369_v4 = vadd.f32 %v1526_v2, %v1949_v1  ;;  %v484_v12 = vmax.f32 %v358_v3, 0.0  ;;  %v422_v53 = vadd.f32 %v1949_v1, %v421_v9 }
  0xe2   : > { %v360_v7 = vpop.f32.mrf.mxu0  ;;  %v1957_v14 = vpop.f32.mrf.mxu1 }
  0xe3   : > { %v361_v8 = vadd.f32 %v1949_v1, %v360_v7  ;;  %v487_v10 = vmax.f32 %v369_v4, 0.0  ;;  %v500_v62 = vmax.f32 %v422_v53, 0.0  ;;  %v2010_v53 = vld [vmem:[%s2155_s2 + $0x1] ss:$0 sm:$0xff] }
  0xe4   : > { %v1529_v11 = vpop.f32.mrf.mxu0  ;;  %v424_v18 = vpop.f32.mrf.mxu1 }
  0xe5   : > { %v485_v13 = vmax.f32 %v361_v8, 0.0  ;;  %v517_v19 = vpack.c.bf16 %v487_v10, %v486_v15  ;;  %v382_v24 = vadd.f32 %v1529_v11, %v1949_v1  ;;  %v425_v54 = vadd.f32 %v1949_v1, %v424_v18 }
  0xe6   : > { %v373_v16 = vpop.f32.mrf.mxu0  ;;  %v1961_v23 = vpop.f32.mrf.mxu1  ;;  %v433_v15 = vadd.f32 %v1957_v14, %v1949_v1 }
  0xe7   : > { %v516_v17 = vpack.c.bf16 %v485_v13, %v484_v12  ;;  %v374_v21 = vadd.f32 %v1949_v1, %v373_v16  ;;  %v490_v33 = vmax.f32 %v382_v24, 0.0  ;;  %v501_v0 = vmax.f32 %v425_v54, 0.0 }
  0xe8   : > { %v1530_v20 = vpop.f32.mrf.mxu0  ;;  %v437_v27 = vpop.f32.mrf.mxu1  ;;  %v430_v12 = vadd.f32 %v1953_v5, %v1949_v1  ;;  %v446_v5 = vadd.f32 %v1961_v23, %v1949_v1 }
  0xe9   : > { %v385_v22 = vadd.f32 %v1530_v20, %v1949_v1  ;;  %1571 = vmatprep.mubr.bf16.mxu1 %v516_v17  ;;  %v488_v30 = vmax.f32 %v374_v21, 0.0  ;;  %v524_v9 = vpack.c.bf16 %v501_v0, %v500_v62  ;;  %v438_v10 = vadd.f32 %v1949_v1, %v437_v27 }
  0xea   : > { %v376_v25 = vpop.f32.mrf.mxu0  ;;  %1572 = vmatmul.mubr.bf16.vlgmr.msra.gmra.mxu1 %v517_v19  ;;  %v1965_v32 = vpop.f32.mrf.mxu1  ;;  %v502_v19 = vmax.f32 %v430_v12, 0.0  ;;  %v503_v20 = vmax.f32 %v433_v15, 0.0 }
  0xeb   : > { %v377_v26 = vadd.f32 %v1949_v1, %v376_v25  ;;  %v491_v28 = vmax.f32 %v385_v22, 0.0  ;;  %v504_v17 = vmax.f32 %v438_v10, 0.0  ;;  %v449_v14 = vadd.f32 %v1965_v32, %v1949_v1 }
  0xec   : > { %v1533_v29 = vpop.f32.mrf.mxu0  ;;  %v440_v36 = vpop.f32.mrf.mxu1 }
  0xed   : > { %v489_v31 = vmax.f32 %v377_v26, 0.0  ;;  %v519_v37 = vpack.c.bf16 %v491_v28, %v490_v33  ;;  %v398_v42 = vadd.f32 %v1533_v29, %v1949_v1  ;;  %v441_v11 = vadd.f32 %v1949_v1, %v440_v36 }
  0xee   : > { %v389_v34 = vpop.f32.mrf.mxu0  ;;  %v1969_v41 = vpop.f32.mrf.mxu1  ;;  %v525_v26 = vpack.c.bf16 %v503_v20, %v502_v19 }
  0xef   : > { %v518_v35 = vpack.c.bf16 %v489_v31, %v488_v30  ;;  %v390_v39 = vadd.f32 %v1949_v1, %v389_v34  ;;  %v494_v50 = vmax.f32 %v398_v42, 0.0  ;;  %v505_v18 = vmax.f32 %v441_v11, 0.0 }
  0xf0   : > { %v1534_v38 = vpop.f32.mrf.mxu0  ;;  %v453_v47 = vpop.f32.mrf.mxu1  ;;  %v506_v30 = vmax.f32 %v446_v5, 0.0  ;;  %v507_v31 = vmax.f32 %v449_v14, 0.0  ;;  %v462_v23 = vadd.f32 %v1969_v41, %v1949_v1  ;;  %v1711_v41 = vld [vmem:[%s2154_s1 + $0x60] sm:$0xff]  }
  0xf1   : > { %v401_v40 = vadd.f32 %v1534_v38, %v1949_v1  ;;  %1575 = vmatprep.mubr.bf16.mxu1 %v518_v35  ;;  %v492_v48 = vmax.f32 %v390_v39, 0.0  ;;  %v526_v22 = vpack.c.bf16 %v505_v18, %v504_v17  ;;  %v454_v24 = vadd.f32 %v1949_v1, %v453_v47  ;;  %1613 = vmatprep.subr.bf16.mxu0 %v1711_v41 }
  0xf2   : > { %v392_v43 = vpop.f32.mrf.mxu0  ;;  %1576 = vmatmul.mubr.bf16.gmra.mxu1 %v519_v37  ;;  %v1550_v57 = vpop.f32.mrf.mxu1  ;;  %v527_v37 = vpack.c.bf16 %v507_v31, %v506_v30  ;;  %1614 = vmatpush3.bf16.msra.mxu0 %v1711_v41 }
  0xf3   : > { %v393_v44 = vadd.f32 %v1949_v1, %v392_v43  ;;  %v495_v45 = vmax.f32 %v401_v40, 0.0  ;;  %v508_v28 = vmax.f32 %v454_v24, 0.0  ;;  %v465_v38 = vadd.f32 %v1550_v57, %v1949_v1 }
  0xf4   : > { %v1537_v46 = vpop.f32.mrf.mxu0  ;;  %v456_v3 = vpop.f32.mrf.mxu1  ;;  %v510_v40 = vmax.f32 %v462_v23, 0.0 }
  0xf5   : > { %v493_v49 = vmax.f32 %v393_v44, 0.0  ;;  %v521_v55 = vpack.c.bf16 %v495_v45, %v494_v50  ;;  %v414_v60 = vadd.f32 %v1537_v46, %v1949_v1  ;;  %v457_v25 = vadd.f32 %v1949_v1, %v456_v3  ;;  %v1712_v50 = vld [vmem:[%s2154_s1 + $0x58] sm:$0xff]  }
  0xf6   : > { %v405_v51 = vpop.f32.mrf.mxu0  ;;  %v1553_v16 = vpop.f32.mrf.mxu1  ;;  %v511_v42 = vmax.f32 %v465_v38, 0.0  ;;  %1615 = vmatprep.subr.bf16.mxu0 %v1712_v50 }
  0xf7   : > { %v520_v52 = vpack.c.bf16 %v493_v49, %v492_v48  ;;  %v406_v58 = vadd.f32 %v1949_v1, %v405_v51  ;;  %v498_v7 = vmax.f32 %v414_v60, 0.0  ;;  %v509_v29 = vmax.f32 %v457_v25, 0.0  ;;  %1616 = vmatpush3.bf16.msra.mxu0 %v1712_v50 }
  0xf8   : > { %v1538_v56 = vpop.f32.mrf.mxu0  ;;  %v469_v21 = vpop.f32.mrf.mxu1  ;;  %v529_v44 = vpack.c.bf16 %v511_v42, %v510_v40  ;;  %v478_v45 = vadd.f32 %v1553_v16, %v1949_v1 }
  0xf9   : > { %v417_v59 = vadd.f32 %v1538_v56, %v1949_v1  ;;  %1579 = vmatprep.mubr.bf16.mxu1 %v520_v52  ;;  %v496_v4 = vmax.f32 %v406_v58, 0.0  ;;  %v528_v34 = vpack.c.bf16 %v509_v29, %v508_v28  ;;  %v470_v35 = vadd.f32 %v1949_v1, %v469_v21 }
  0xfa   : > { %v408_v61 = vpop.f32.mrf.mxu0  ;;  %1580 = vmatmul.mubr.bf16.gmra.mxu1 %v521_v55  ;;  %v1554_v27 = vpop.f32.mrf.mxu1  ;;  %v514_v47 = vmax.f32 %v478_v45, 0.0 }
  0xfb   : > { %v409_v63 = vadd.f32 %v1949_v1, %v408_v61  ;;  %v499_v2 = vmax.f32 %v417_v59, 0.0  ;;  %v512_v32 = vmax.f32 %v470_v35, 0.0  ;;  %v481_v46 = vadd.f32 %v1554_v27, %v1949_v1 }
  0xfc   : > { %v472_v33 = vpop.f32.mrf.mxu1 }
  0xfd   : > { %v497_v6 = vmax.f32 %v409_v63, 0.0  ;;  %v523_v13 = vpack.c.bf16 %v499_v2, %v498_v7  ;;  %v473_v36 = vadd.f32 %v1949_v1, %v472_v33  ;;  %v515_v48 = vmax.f32 %v481_v46, 0.0  ;;  %v1713_v1 = vld [vmem:[%s2154_s1 + $0x50] sm:$0xff]  }
  0xfe   : > { %1617 = vmatprep.subr.bf16.mxu0 %v1713_v1 }
  0xff   : > { %v522_v8 = vpack.c.bf16 %v497_v6, %v496_v4  ;;  %v513_v39 = vmax.f32 %v473_v36, 0.0  ;;  %v531_v49 = vpack.c.bf16 %v515_v48, %v514_v47  ;;  %1618 = vmatpush3.bf16.msra.mxu0 %v1713_v1 }
 0x101   : > { %1583 = vmatprep.mubr.bf16.mxu1 %v522_v8  ;;  %v530_v43 = vpack.c.bf16 %v513_v39, %v512_v32 }
 0x102   : > { %1584 = vmatmul.mubr.bf16.gmra.mxu1 %v523_v13 }
 0x103   : > { %1587 = vmatprep.mubr.bf16.mxu1 %v524_v9 }
 0x10a   : > { %1588 = vmatmul.mubr.bf16.gmra.mxu1 %v525_v26 }
 0x10b   : > { %1591 = vmatprep.mubr.bf16.mxu1 %v526_v22 }
 0x112   : > { %1592 = vmatmul.mubr.bf16.gmra.mxu1 %v527_v37 }
 0x113   : > { %1595 = vmatprep.mubr.bf16.mxu1 %v528_v34 }
 0x11a   : > { %1596 = vmatmul.mubr.bf16.gmra.mxu1 %v529_v44 }
 0x11b   : > { %1599 = vmatprep.mubr.bf16.mxu1 %v530_v43 }
 0x122   : > { %1600 = vmatmul.mubr.bf16.gmra.mxu1 %v531_v49 }
 0x1aa   : > { %v1573_v51 = vpop.f32.mrf.mxu1 }
 0x1ab   : > { %v628_v57 = vadd.f32 %v1573_v51, %v2010_v53 }
 0x1ac   : > { %v619_v52 = vpop.f32.mrf.mxu1 }
 0x1ad   : > { %v620_v55 = vadd.f32 %v2010_v53, %v619_v52  ;;  %v748_v0 = vmax.f32 %v628_v57, 0.0 }
 0x1ae   : > { %v1574_v54 = vpop.f32.mrf.mxu1 }
 0x1af   : > { %v631_v56 = vadd.f32 %v1574_v54, %v2010_v53  ;;  %v746_v62 = vmax.f32 %v620_v55, 0.0 }
 0x1b0   : > { %v622_v58 = vpop.f32.mrf.mxu1 }
 0x1b1   : > { %v623_v59 = vadd.f32 %v2010_v53, %v622_v58  ;;  %v749_v60 = vmax.f32 %v631_v56, 0.0 }
 0x1b2   : > { %v1577_v61 = vpop.f32.mrf.mxu1 }
 0x1b3   : > { %v747_v63 = vmax.f32 %v623_v59, 0.0  ;;  %v779_v4 = vpack.c.bf16 %v749_v60, %v748_v0  ;;  %v644_v9 = vadd.f32 %v1577_v61, %v2010_v53 }
 0x1b4   : > { %v635_v2 = vpop.f32.mrf.mxu1 }
 0x1b5   : > { %v778_v3 = vpack.c.bf16 %v747_v63, %v746_v62  ;;  %v636_v7 = vadd.f32 %v2010_v53, %v635_v2  ;;  %v752_v17 = vmax.f32 %v644_v9, 0.0 }
 0x1b6   : > { %v1578_v6 = vpop.f32.mrf.mxu1 }
 0x1b7   : > { %v647_v8 = vadd.f32 %v1578_v6, %v2010_v53  ;;  %1619 = vmatprep.mubr.bf16.mxu0 %v778_v3  ;;  %v750_v15 = vmax.f32 %v636_v7, 0.0 }
 0x1b8   : > { %v638_v10 = vpop.f32.mrf.mxu1  ;;  %1620 = vmatmul.mubr.bf16.vlgmr.msra.gmra.mxu0 %v779_v4 }
 0x1b9   : > { %v639_v11 = vadd.f32 %v2010_v53, %v638_v10  ;;  %v753_v12 = vmax.f32 %v647_v8, 0.0 }
 0x1ba   : > { %v1581_v13 = vpop.f32.mrf.mxu1 }
 0x1bb   : > { %v751_v16 = vmax.f32 %v639_v11, 0.0  ;;  %v781_v20 = vpack.c.bf16 %v753_v12, %v752_v17  ;;  %v660_v25 = vadd.f32 %v1581_v13, %v2010_v53 }
 0x1bc   : > { %v651_v18 = vpop.f32.mrf.mxu1 }
 0x1bd   : > { %v780_v19 = vpack.c.bf16 %v751_v16, %v750_v15  ;;  %v652_v22 = vadd.f32 %v2010_v53, %v651_v18  ;;  %v756_v30 = vmax.f32 %v660_v25, 0.0 }
 0x1be   : > { %v1582_v21 = vpop.f32.mrf.mxu1 }
 0x1bf   : > { %v663_v24 = vadd.f32 %v1582_v21, %v2010_v53  ;;  %1623 = vmatprep.mubr.bf16.mxu0 %v780_v19  ;;  %v754_v28 = vmax.f32 %v652_v22, 0.0 }
 0x1c0   : > { %v654_v26 = vpop.f32.mrf.mxu1  ;;  %1624 = vmatmul.mubr.bf16.gmra.mxu0 %v781_v20 }
 0x1c1   : > { %v655_v5 = vadd.f32 %v2010_v53, %v654_v26  ;;  %v757_v14 = vmax.f32 %v663_v24, 0.0 }
 0x1c2   : > { %v1585_v27 = vpop.f32.mrf.mxu1 }
 0x1c3   : > { %v755_v29 = vmax.f32 %v655_v5, 0.0  ;;  %v783_v34 = vpack.c.bf16 %v757_v14, %v756_v30  ;;  %v676_v23 = vadd.f32 %v1585_v27, %v2010_v53 }
 0x1c4   : > { %v667_v31 = vpop.f32.mrf.mxu1 }
 0x1c5   : > { %v782_v33 = vpack.c.bf16 %v755_v29, %v754_v28  ;;  %v668_v36 = vadd.f32 %v2010_v53, %v667_v31  ;;  %v760_v44 = vmax.f32 %v676_v23, 0.0 }
 0x1c6   : > { %v1586_v35 = vpop.f32.mrf.mxu1 }
 0x1c7   : > { %v679_v37 = vadd.f32 %v1586_v35, %v2010_v53  ;;  %1627 = vmatprep.mubr.bf16.mxu0 %v782_v33  ;;  %v758_v42 = vmax.f32 %v668_v36, 0.0 }
 0x1c8   : > { %v670_v38 = vpop.f32.mrf.mxu1  ;;  %1628 = vmatmul.mubr.bf16.gmra.mxu0 %v783_v34 }
 0x1c9   : > { %v671_v32 = vadd.f32 %v2010_v53, %v670_v38  ;;  %v761_v39 = vmax.f32 %v679_v37, 0.0 }
 0x1ca   : > { %v1589_v40 = vpop.f32.mrf.mxu1 }
 0x1cb   : > { %v759_v43 = vmax.f32 %v671_v32, 0.0  ;;  %v785_v47 = vpack.c.bf16 %v761_v39, %v760_v44  ;;  %v692_v50 = vadd.f32 %v1589_v40, %v2010_v53  ;;  %v2048_v39 = vld [vmem:[%s2155_s2 + $0x2] ss:$0 sm:$0xff] }
 0x1cc   : > { %v683_v45 = vpop.f32.mrf.mxu1 }
 0x1cd   : > { %v784_v46 = vpack.c.bf16 %v759_v43, %v758_v42  ;;  %v684_v49 = vadd.f32 %v2010_v53, %v683_v45  ;;  %v764_v57 = vmax.f32 %v692_v50, 0.0 }
 0x1ce   : > { %v1590_v48 = vpop.f32.mrf.mxu1 }
 0x1cf   : > { %v695_v41 = vadd.f32 %v1590_v48, %v2010_v53  ;;  %1631 = vmatprep.mubr.bf16.mxu0 %v784_v46  ;;  %v762_v55 = vmax.f32 %v684_v49, 0.0 }
 0x1d0   : > { %v686_v1 = vpop.f32.mrf.mxu1  ;;  %1632 = vmatmul.mubr.bf16.gmra.mxu0 %v785_v47 }
 0x1d1   : > { %v687_v51 = vadd.f32 %v2010_v53, %v686_v1  ;;  %v765_v52 = vmax.f32 %v695_v41, 0.0 }
 0x1d2   : > { %v1593_v54 = vpop.f32.mrf.mxu1 }
 0x1d3   : > { %v763_v56 = vmax.f32 %v687_v51, 0.0  ;;  %v787_v60 = vpack.c.bf16 %v765_v52, %v764_v57  ;;  %v708_v0 = vadd.f32 %v1593_v54, %v2010_v53 }
 0x1d4   : > { %v699_v58 = vpop.f32.mrf.mxu1 }
 0x1d5   : > { %v786_v59 = vpack.c.bf16 %v763_v56, %v762_v55  ;;  %v700_v62 = vadd.f32 %v2010_v53, %v699_v58  ;;  %v768_v9 = vmax.f32 %v708_v0, 0.0 }
 0x1d6   : > { %v1594_v61 = vpop.f32.mrf.mxu1 }
 0x1d7   : > { %v711_v63 = vadd.f32 %v1594_v61, %v2010_v53  ;;  %1635 = vmatprep.mubr.bf16.mxu0 %v786_v59  ;;  %v766_v7 = vmax.f32 %v700_v62, 0.0 }
 0x1d8   : > { %v702_v2 = vpop.f32.mrf.mxu1  ;;  %1636 = vmatmul.mubr.bf16.gmra.mxu0 %v787_v60 }
 0x1d9   : > { %v703_v3 = vadd.f32 %v2010_v53, %v702_v2  ;;  %v769_v4 = vmax.f32 %v711_v63, 0.0 }
 0x1da   : > { %v1597_v6 = vpop.f32.mrf.mxu1 }
 0x1db   : > { %v767_v8 = vmax.f32 %v703_v3, 0.0  ;;  %v789_v12 = vpack.c.bf16 %v769_v4, %v768_v9  ;;  %v724_v17 = vadd.f32 %v1597_v6, %v2010_v53 }
 0x1dc   : > { %v715_v10 = vpop.f32.mrf.mxu1 }
 0x1dd   : > { %v788_v11 = vpack.c.bf16 %v767_v8, %v766_v7  ;;  %v716_v15 = vadd.f32 %v2010_v53, %v715_v10  ;;  %v772_v25 = vmax.f32 %v724_v17, 0.0 }
 0x1de   : > { %v1598_v13 = vpop.f32.mrf.mxu1 }
 0x1df   : > { %v727_v16 = vadd.f32 %v1598_v13, %v2010_v53  ;;  %1639 = vmatprep.mubr.bf16.mxu0 %v788_v11  ;;  %v770_v22 = vmax.f32 %v716_v15, 0.0 }
 0x1e0   : > { %v718_v18 = vpop.f32.mrf.mxu1  ;;  %1640 = vmatmul.mubr.bf16.gmra.mxu0 %v789_v12 }
 0x1e1   : > { %v719_v19 = vadd.f32 %v2010_v53, %v718_v18  ;;  %v773_v20 = vmax.f32 %v727_v16, 0.0 }
 0x1e2   : > { %v1601_v21 = vpop.f32.mrf.mxu1 }
 0x1e3   : > { %v771_v24 = vmax.f32 %v719_v19, 0.0  ;;  %v791_v14 = vpack.c.bf16 %v773_v20, %v772_v25  ;;  %v740_v30 = vadd.f32 %v1601_v21, %v2010_v53 }
 0x1e4   : > { %v731_v26 = vpop.f32.mrf.mxu1 }
 0x1e5   : > { %v790_v5 = vpack.c.bf16 %v771_v24, %v770_v22  ;;  %v732_v28 = vadd.f32 %v2010_v53, %v731_v26  ;;  %v776_v37 = vmax.f32 %v740_v30, 0.0 }
 0x1e6   : > { %v1602_v27 = vpop.f32.mrf.mxu1 }
 0x1e7   : > { %v743_v29 = vadd.f32 %v1602_v27, %v2010_v53  ;;  %1643 = vmatprep.mubr.bf16.mxu0 %v790_v5  ;;  %v774_v35 = vmax.f32 %v732_v28, 0.0 }
 0x1e8   : > { %v734_v31 = vpop.f32.mrf.mxu1  ;;  %1644 = vmatmul.mubr.bf16.gmra.mxu0 %v791_v14 }
 0x1e9   : > { %v735_v33 = vadd.f32 %v2010_v53, %v734_v31  ;;  %v777_v34 = vmax.f32 %v743_v29, 0.0 }
 0x1eb   : > { %v775_v36 = vmax.f32 %v735_v33, 0.0  ;;  %v793_v38 = vpack.c.bf16 %v777_v34, %v776_v37 }
 0x1ed   : > { %v792_v23 = vpack.c.bf16 %v775_v36, %v774_v35 }
 0x1ef   : > { %1647 = vmatprep.mubr.bf16.mxu0 %v792_v23 }
 0x1f0   : > { %1648 = vmatmul.mubr.bf16.gmra.mxu0 %v793_v38 }
 0x278   : > { %v1621_v32 = vpop.f32.mrf.mxu0 }
 0x279   : > { %v890_v53 = vadd.f32 %v1621_v32, %v2048_v39 }
 0x27a   : > { %v881_v40 = vpop.f32.mrf.mxu0 }
 0x27b   : > { %v882_v45 = vadd.f32 %v2048_v39, %v881_v40 }
 0x27c   : > { %v1622_v42 = vpop.f32.mrf.mxu0 }
 0x27d   : > { %v893_v43 = vadd.f32 %v1622_v42, %v2048_v39 }
 0x27e   : > { %v884_v44 = vpop.f32.mrf.mxu0 }
 0x27f   : > { %v1366_v46 = vpack.c.bf16 %v893_v43, %v890_v53  ;;  %v885_v47 = vadd.f32 %v2048_v39, %v884_v44 }
 0x280   : > { %v1625_v48 = vpop.f32.mrf.mxu0 }
 0x281   : > { %1438 = vst [vmem:[%s2056_s10 + $0x8] sm:$0xff] %v1366_v46   ;;  %v1361_v49 = vpack.c.bf16 %v885_v47, %v882_v45  ;;  %v906_v1 = vadd.f32 %v1625_v48, %v2048_v39 }
 0x282   : > { %v897_v41 = vpop.f32.mrf.mxu0 }
 0x283   : > { %1362 = vst [vmem:[%s2056_s10] sm:$0xff] %v1361_v49   ;;  %v898_v54 = vadd.f32 %v2048_v39, %v897_v41 }
 0x284   : > { %v1626_v50 = vpop.f32.mrf.mxu0 }
 0x285   : > { %v909_v51 = vadd.f32 %v1626_v50, %v2048_v39 }
 0x286   : > { %v900_v52 = vpop.f32.mrf.mxu0 }
 0x287   : > { %v1376_v55 = vpack.c.bf16 %v909_v51, %v906_v1  ;;  %v901_v56 = vadd.f32 %v2048_v39, %v900_v52 }
 0x288   : > { %v1629_v57 = vpop.f32.mrf.mxu0 }
 0x289   : > { %1440 = vst [vmem:[%s2056_s10 + $0x18] sm:$0xff] %v1376_v55   ;;  %v1371_v58 = vpack.c.bf16 %v901_v56, %v898_v54  ;;  %v922_v61 = vadd.f32 %v1629_v57, %v2048_v39 }
 0x28a   : > { %v913_v59 = vpop.f32.mrf.mxu0 }
 0x28b   : > { %1439 = vst [vmem:[%s2056_s10 + $0x10] sm:$0xff] %v1371_v58   ;;  %v914_v0 = vadd.f32 %v2048_v39, %v913_v59 }
 0x28c   : > { %v1630_v60 = vpop.f32.mrf.mxu0 }
 0x28d   : > { %v925_v62 = vadd.f32 %v1630_v60, %v2048_v39 }
 0x28e   : > { %v916_v63 = vpop.f32.mrf.mxu0 }
 0x28f   : > { %v1386_v2 = vpack.c.bf16 %v925_v62, %v922_v61  ;;  %v917_v3 = vadd.f32 %v2048_v39, %v916_v63 }
 0x290   : > { %v1633_v4 = vpop.f32.mrf.mxu0 }
 0x291   : > { %1442 = vst [vmem:[%s2056_s10 + $0x28] sm:$0xff] %v1386_v2   ;;  %v1381_v6 = vpack.c.bf16 %v917_v3, %v914_v0  ;;  %v938_v9 = vadd.f32 %v1633_v4, %v2048_v39 }
 0x292   : > { %v929_v7 = vpop.f32.mrf.mxu0 }
 0x293   : > { %1441 = vst [vmem:[%s2056_s10 + $0x20] sm:$0xff] %v1381_v6   ;;  %v930_v12 = vadd.f32 %v2048_v39, %v929_v7 }
 0x294   : > { %v1634_v8 = vpop.f32.mrf.mxu0 }
 0x295   : > { %v941_v10 = vadd.f32 %v1634_v8, %v2048_v39 }
 0x296   : > { %v932_v11 = vpop.f32.mrf.mxu0 }
 0x297   : > { %v1396_v13 = vpack.c.bf16 %v941_v10, %v938_v9  ;;  %v933_v15 = vadd.f32 %v2048_v39, %v932_v11 }
 0x298   : > { %v1637_v16 = vpop.f32.mrf.mxu0 }
 0x299   : > { %1444 = vst [vmem:[%s2056_s10 + $0x38] sm:$0xff] %v1396_v13   ;;  %v1391_v17 = vpack.c.bf16 %v933_v15, %v930_v12  ;;  %v954_v20 = vadd.f32 %v1637_v16, %v2048_v39 }
 0x29a   : > { %v945_v18 = vpop.f32.mrf.mxu0 }
 0x29b   : > { %1443 = vst [vmem:[%s2056_s10 + $0x30] sm:$0xff] %v1391_v17   ;;  %v946_v24 = vadd.f32 %v2048_v39, %v945_v18 }
 0x29c   : > { %v1638_v19 = vpop.f32.mrf.mxu0 }
 0x29d   : > { %v957_v21 = vadd.f32 %v1638_v19, %v2048_v39 }
 0x29e   : > { %v948_v22 = vpop.f32.mrf.mxu0 }
 0x29f   : > { %v1406_v25 = vpack.c.bf16 %v957_v21, %v954_v20  ;;  %v949_v26 = vadd.f32 %v2048_v39, %v948_v22 }
 0x2a0   : > { %v1641_v5 = vpop.f32.mrf.mxu0 }
 0x2a1   : > { %1446 = vst [vmem:[%s2056_s10 + $0x48] sm:$0xff] %v1406_v25   ;;  %v1401_v14 = vpack.c.bf16 %v949_v26, %v946_v24  ;;  %v970_v29 = vadd.f32 %v1641_v5, %v2048_v39 }
 0x2a2   : > { %v961_v27 = vpop.f32.mrf.mxu0 }
 0x2a3   : > { %1445 = vst [vmem:[%s2056_s10 + $0x40] sm:$0xff] %v1401_v14   ;;  %v962_v33 = vadd.f32 %v2048_v39, %v961_v27 }
 0x2a4   : > { %v1642_v28 = vpop.f32.mrf.mxu0 }
 0x2a5   : > { %v973_v30 = vadd.f32 %v1642_v28, %v2048_v39 }
 0x2a6   : > { %v964_v31 = vpop.f32.mrf.mxu0 }
 0x2a7   : > { %v1416_v34 = vpack.c.bf16 %v973_v30, %v970_v29  ;;  %v965_v35 = vadd.f32 %v2048_v39, %v964_v31 }
 0x2a8   : > { %v1645_v36 = vpop.f32.mrf.mxu0 }
 0x2a9   : > { %1448 = vst [vmem:[%s2056_s10 + $0x58] sm:$0xff] %v1416_v34   ;;  %v1411_v37 = vpack.c.bf16 %v965_v35, %v962_v33  ;;  %v986_v32 = vadd.f32 %v1645_v36, %v2048_v39 }
 0x2aa   : > { %v977_v23 = vpop.f32.mrf.mxu0 }
 0x2ab   : > { %1447 = vst [vmem:[%s2056_s10 + $0x50] sm:$0xff] %v1411_v37   ;;  %v978_v53 = vadd.f32 %v2048_v39, %v977_v23 }
 0x2ac   : > { %v1646_v38 = vpop.f32.mrf.mxu0 }
 0x2ad   : > { %v989_v40 = vadd.f32 %v1646_v38, %v2048_v39 }
 0x2ae   : > { %v980_v42 = vpop.f32.mrf.mxu0 }
 0x2af   : > { %v1426_v43 = vpack.c.bf16 %v989_v40, %v986_v32  ;;  %v981_v44 = vadd.f32 %v2048_v39, %v980_v42 }
 0x2b0   : > { %v1649_v45 = vpop.f32.mrf.mxu0 }
 0x2b1   : > { %1450 = vst [vmem:[%s2056_s10 + $0x68] sm:$0xff] %v1426_v43   ;;  %v1421_v46 = vpack.c.bf16 %v981_v44, %v978_v53  ;;  %v1002_v49 = vadd.f32 %v1649_v45, %v2048_v39 }
 0x2b2   : > { %v993_v47 = vpop.f32.mrf.mxu0 }
 0x2b3   : > { %1449 = vst [vmem:[%s2056_s10 + $0x60] sm:$0xff] %v1421_v46   ;;  %v994_v1 = vadd.f32 %v2048_v39, %v993_v47 }
 0x2b4   : > { %v1650_v48 = vpop.f32.mrf.mxu0 }
 0x2b5   : > { %v1005_v41 = vadd.f32 %v1650_v48, %v2048_v39 }
 0x2b6   : > { %v996_v50 = vpop.f32.mrf.mxu0 }
 0x2b7   : > { %v1436_v51 = vpack.c.bf16 %v1005_v41, %v1002_v49  ;;  %v997_v52 = vadd.f32 %v2048_v39, %v996_v50 }
 0x2b9   : > { %1452 = vst [vmem:[%s2056_s10 + $0x78] sm:$0xff] %v1436_v51   ;;  %v1431_v54 = vpack.c.bf16 %v997_v52, %v994_v1 }
 0x2bb   : > { %1451 = vst [vmem:[%s2056_s10 + $0x70] sm:$0xff] %v1431_v54  }
 0x2bc   : > { %1727 = shalt.err (!%p1724_p3)
}
 0x2bd   : > { %s1728_s29 = scalar_lea.hbm %s2105_s24, 2048  ;;  %s1732_s5 = scalar_lea.hbm %s2156_s3, 4096 }
 0x2be   : > { %p1729_p4 = scmp.ne.s32.totalorder %s2105_s24, %s1728_s29  ;;  %p1733_p9 = scmp.lt.s32.totalorder %s2105_s24, %s2156_s3 }
 0x2bf   : > { %p1734_p10 = scmp.lt.s32.totalorder %s1732_s5, %s1728_s29 }
 0x2c0   : > { %p1730_p7 = pnand %p1729_p4, %p1837_p5 }
 0x2c1   : > { %p1735_p11 = por %p1734_p10, %p1733_p9 }
 0x2c2   : > { %p1731_p8 = pneg %p1730_p7 }
 0x2c4   : > { %p1736_p12 = pnand %p1735_p11, %p1731_p8 }
 0x2c6   : > { %1739 = shalt.err (!%p1736_p12)
}
 0x2c7   : > { %s1777_s8 = smov 64   ;;  %s1778_s9 = smov 4  }
 0x2c8   : > { %1655 = dma.vmem_to_hbm [thread:$0]  (%p1837_p5), %s2107_s17, 2048, %s2105_s24, %s2113_s16, %s1777_s8, %s1777_s8, %s1778_s9  }
 0x2c9 PF: > { %p1661_p13 = scmp.ge.s32.totalorder %s1774_s15, 2  ;;  %s1197_s10 = sand.u32 1, %s1762_s12  }
 0x2ca   : > { %s1198_s11 = scalar_lea.sflag [#allocation3], %s1197_s10 }
 0x2cb   : > { %p1658_p0 = pnand %p1661_p13, %p1841_p6 }
 0x2cd   : > { %p1659_p1 = pneg %p1658_p0 }
 0x2cf   : > { %1757 = dma.done.wait (%p1659_p1), %s1198_s11, 2048  }
 0x2d0   : > { %1759 = vsyncadd (%p1659_p1), %s1198_s11, 4294965248  ;;  %p13_p2 = scmp.ge.s32.totalorder %s1824_s18, 4   ;;  %s2159_s12 = smov %s1766_s13 }
 0x2d1   : > { %s2160_s13 = smov %s1770_s14  ;;  %s2161_s14 = smov %s1835_s21 }
 0x2d2   : > { %s2162_s15 = smov %s1824_s18  ;;  %15 = sbr.rel (!%p13_p2) target bundleno = 3 (0x3), region = 67 }
 0x2d7   :  { %1203 = vsyncpa [#allocation3], 1 }
 0x2d8   :  { %1205 = vsyncpa [#allocation3 + $0x1], 1 }

</bundles_post_ra>
